<compile_context>
chip_gen: v5e
topology: v5e:2x2
jax: 0.10.0
libtpu: 0.0.40
codegen_flags: <defaults>
</compile_context>

<pallas_src>
import math
from functools import partial

import jax
import jax.numpy as jnp
from jax.experimental import pallas as pl
from jax.experimental.pallas import tpu as pltpu


def _round_up(x, m):
    return ((x + m - 1) // m) * m


def fc_decoder_kernel(hs_ref, w1_ref, b1_ref, w2_ref, b2_ref, out_ref, *, input_num):
    """One batch tile of the FC decoder.

    hs_ref : (input_num, TM, dim_ff)   seq-first activations (un-permuted, HBM dtype)
    w1_ref : (input_num, dim_ff, Hp)   first Linear weight, VMEM-resident
    b1_ref : (1, Hp)                   f32
    w2_ref : (Hp, Cp)                  VMEM-resident
    b2_ref : (1, Cp)                   f32
    out_ref: (TM, Cp)
    """
    mm_dtype = w1_ref.dtype  # bf16 fast path or f32

    # Fused permute(1,0,2)+flatten(1) + first Linear:
    #   x[b, n*dim_ff + f] = hs[n, b, f]  =>  x @ W1 = sum_n hs[n] @ W1[n]
    # NOTE: Mosaic's dot_general doesn't lower multi-contracting dims ((n, f)),
    # so keep a static unroll; the (input_num-1) (TM, 128) f32 adds are tiny and
    # sit under the hs DMA shadow. Cast to bf16 per-tile, in-kernel (no extra
    # HBM pass over hs in the wrapper).
    h = jnp.dot(hs_ref[0].astype(mm_dtype), w1_ref[0],
                preferred_element_type=jnp.float32)
    for n in range(1, input_num):                      # static unroll (MXU)
        h = h + jnp.dot(hs_ref[n].astype(mm_dtype), w1_ref[n],
                        preferred_element_type=jnp.float32)

    h = jax.nn.sigmoid(h + b1_ref[...])                # bias + sigmoid in f32 (VPU/EUP)
    # dropout1: identity in eval/inference mode.

    out = jnp.dot(h.astype(w2_ref.dtype), w2_ref[...],
                  preferred_element_type=jnp.float32) + b2_ref[...]
    out_ref[...] = out.astype(out_ref.dtype)


def fc_decoder_forward(hs, w1, b1, w2, b2, *, tm=None, use_bf16=True,
                       out_dtype=jnp.float32):
    """hs: (input_num, batch, dim_feedforward) -> (batch, num_class).

    w1: (dim_ff*input_num, hidden), b1: (hidden,)
    w2: (hidden, num_class),        b2: (num_class,)
    tm: batch tile; None = auto-size from device VMEM (rounded to a multiple of 8).
    use_bf16: cast matmul inputs to bf16 in-kernel (f32 accumulation).
    """
    input_num, batch, dim_ff = hs.shape
    d_in, hidden = w1.shape
    num_class = w2.shape[1]
    assert d_in == input_num * dim_ff

    # Lane-dense padding of hidden / num_class up to 128 (and no wider).
    hp = _round_up(max(hidden, 128), 128)
    cp = _round_up(max(num_class, 128), 128)

    w_dtype = jnp.bfloat16 if use_bf16 else jnp.float32
    w_bytes = jnp.dtype(w_dtype).itemsize
    hs_bytes = jnp.dtype(hs.dtype).itemsize
    out_bytes = jnp.dtype(out_dtype).itemsize

    w1_p = jnp.pad(w1.reshape(input_num, dim_ff, hidden),
                   ((0, 0), (0, 0), (0, hp - hidden))).astype(w_dtype)
    b1_p = jnp.pad(b1.reshape(1, hidden), ((0, 0), (0, hp - hidden)))
    # Zero rows [hidden:hp] kill the sigmoid(0)=0.5 contribution of padded lanes.
    w2_p = jnp.pad(w2, ((0, hp - hidden), (0, cp - num_class))).astype(w_dtype)
    b2_p = jnp.pad(b2.reshape(1, num_class), ((0, 0), (0, cp - num_class)))

    # --- VMEM budget / tile-size selection (per-generation) -------------------
    try:
        vmem_cap = int(pltpu.get_tpu_info().vmem_capacity_bytes)
    except Exception:
        vmem_cap = 64 * 1024 * 1024          # conservative (v7x per-TC)
    budget = int(vmem_cap * 0.65)

    # Single resident copy of weights/biases + double-buffered hs stream + out.
    fixed_bytes = (input_num * dim_ff * hp + hp * cp) * w_bytes + (hp + cp) * 4
    per_row_bytes = 2 * input_num * dim_ff * hs_bytes + 2 * cp * out_bytes

    batch_r8 = _round_up(batch, 8)
    tm_max = min(1024, batch_r8)
    if batch_r8 >= 16:
        # Ensure >=2 batch tiles so v7x's two TensorCores both get work
        # (neutral on single-TC v5e/v6e).
        tm_max = min(tm_max, _round_up(pl.cdiv(batch_r8, 2), 8))
    if budget > fixed_bytes:
        tm_budget = max(8, ((budget - fixed_bytes) // per_row_bytes) // 8 * 8)
    else:
        tm_budget = 8
    if tm is None:
        tm = max(8, min(tm_max, tm_budget))
    else:
        tm = max(8, min(_round_up(tm, 8), batch_r8, tm_budget))

    grid = (pl.cdiv(batch, tm),)   # ragged last tile handled by Pallas masking

    vmem_limit = int(1.3 * (fixed_bytes + tm * per_row_bytes)) + (1 << 20)
    vmem_limit = min(max(vmem_limit, 4 * 1024 * 1024), vmem_cap)

    # Real (unpadded) work estimate so XLA's scheduler isn't biased by padding.
    cost = pl.CostEstimate(
        flops=2 * batch * d_in * hidden + 2 * batch * hidden * num_class,
        transcendentals=batch * hidden,
        bytes_accessed=(hs.size * hs_bytes
                        + w1_p.size * w_bytes + w2_p.size * w_bytes
                        + b1_p.size * 4 + b2_p.size * 4
                        + batch * cp * out_bytes),
    )

    # Weights/biases: whole-array VMEM residency (single buffer, DMA'd once).
    resident = lambda: pl.BlockSpec(memory_space=pltpu.MemorySpace.VMEM)

    out = pl.pallas_call(
        partial(fc_decoder_kernel, input_num=input_num),
        out_shape=jax.ShapeDtypeStruct((batch, cp), out_dtype),
        grid_spec=pltpu.PrefetchScalarGridSpec(
            num_scalar_prefetch=0,
            grid=grid,
            in_specs=[
                pl.BlockSpec((input_num, tm, dim_ff), lambda i: (0, i, 0)),  # hs stream
                resident(),   # w1
                resident(),   # b1
                resident(),   # w2
                resident(),   # b2
            ],
            out_specs=pl.BlockSpec((tm, cp), lambda i: (i, 0)),
        ),
        compiler_params=pltpu.CompilerParams(
            dimension_semantics=("parallel",),   # batch axis -> megacore-shardable
            vmem_limit_bytes=vmem_limit,
        ),
        cost_estimate=cost,
    )(hs, w1_p, b1_p, w2_p, b2_p)

    return out[:, :num_class]


def init_linear_params(key, fan_in, fan_out):
    """PyTorch-style nn.Linear init: U(-1/sqrt(fan_in), 1/sqrt(fan_in)).

    Returns (weight_T, bias) with weight stored as (fan_in, fan_out) so the
    kernel computes x @ W directly (== PyTorch x @ W.T)."""
    k_w, k_b = jax.random.split(key)
    bound = 1.0 / math.sqrt(fan_in)
    w = jax.random.uniform(k_w, (fan_in, fan_out), jnp.float32, -bound, bound)
    b = jax.random.uniform(k_b, (fan_out,), jnp.float32, -bound, bound)
    return w, b


def reference_forward(hs, w1, b1, w2, b2):
    input_num, batch, dim_ff = hs.shape
    x = jnp.transpose(hs, (1, 0, 2)).reshape(batch, input_num * dim_ff)
    h = jax.nn.sigmoid(x @ w1 + b1)
    return h @ w2 + b2


if __name__ == "__main__":
    # Small, module-consistent shapes.
    input_num = 3
    dim_feedforward = 96                   # divisible by input_num -> hidden = 32
    num_class = 16
    batch = 8

    d_in = dim_feedforward * input_num     # 288
    hidden = dim_feedforward // input_num  # 32

    key = jax.random.PRNGKey(0)
    k_hs, k_l1, k_l3 = jax.random.split(key, 3)

    hs = jax.random.normal(k_hs, (input_num, batch, dim_feedforward), jnp.float32)
    w1, b1 = init_linear_params(k_l1, d_in, hidden)
    w2, b2 = init_linear_params(k_l3, hidden, num_class)

    ref = reference_forward(hs, w1, b1, w2, b2)

    # f32 MXU-input path: tight check against the PyTorch-equivalent reference.
    out_f32 = jax.block_until_ready(
        fc_decoder_forward(hs, w1, b1, w2, b2, use_bf16=False))
    assert out_f32.shape == (batch, num_class)
    assert jnp.allclose(out_f32, ref, atol=1e-4, rtol=1e-4), "f32 path mismatch"

    # Default bf16 MXU-input path (f32 accumulation): loose tolerance check.
    out_bf16 = jax.block_until_ready(fc_decoder_forward(hs, w1, b1, w2, b2))
    assert out_bf16.shape == (batch, num_class)
    assert jnp.allclose(out_bf16, ref, atol=5e-2, rtol=5e-2), "bf16 path mismatch"

    print("KERNEL_OK")
</pallas_src>

<mosaic_0001>
module attributes {stable_mosaic.version = 11 : i64} {
  func.func @fc_decoder_kernel(%arg0: i32, %arg1: memref<3x8x96xf32, #tpu.memory_space<vmem>>, %arg2: memref<3x96x128xf32, #tpu.memory_space<vmem>>, %arg3: memref<1x128xf32, #tpu.memory_space<vmem>>, %arg4: memref<128x128xf32, #tpu.memory_space<vmem>>, %arg5: memref<1x128xf32, #tpu.memory_space<vmem>>, %arg6: memref<8x128xf32, #tpu.memory_space<vmem>>) attributes {dimension_semantics = [#tpu.dimension_semantics<parallel>], iteration_bounds = array<i64: 1>, scalar_prefetch = 0 : i64, scratch_operands = 0 : i64, tpu.core_type = #tpu.core_type<tc>, window_params = [{transform_indices = @transform_0, window_bounds = array<i64: 3, 8, 96>}, {pipeline_mode = #tpu.pipeline_mode<synchronous>, transform_indices = @transform_1, window_bounds = array<i64: 3, 96, 128>}, {pipeline_mode = #tpu.pipeline_mode<synchronous>, transform_indices = @transform_2, window_bounds = array<i64: 1, 128>}, {pipeline_mode = #tpu.pipeline_mode<synchronous>, transform_indices = @transform_3, window_bounds = array<i64: 128, 128>}, {pipeline_mode = #tpu.pipeline_mode<synchronous>, transform_indices = @transform_4, window_bounds = array<i64: 1, 128>}, {transform_indices = @transform_5, window_bounds = array<i64: 8, 128>}]} {
    %c0 = arith.constant 0 : index
    %c0_0 = arith.constant 0 : index
    %c0_1 = arith.constant 0 : index
    %0 = vector.load %arg1[%c0, %c0_0, %c0_1] : memref<3x8x96xf32, #tpu.memory_space<vmem>>, vector<1x8x96xf32>
    %1 = vector.shape_cast %0 : vector<1x8x96xf32> to vector<8x96xf32>
    %c0_2 = arith.constant 0 : index
    %c0_3 = arith.constant 0 : index
    %c0_4 = arith.constant 0 : index
    %2 = vector.load %arg2[%c0_2, %c0_3, %c0_4] : memref<3x96x128xf32, #tpu.memory_space<vmem>>, vector<1x96x128xf32>
    %3 = vector.shape_cast %2 : vector<1x96x128xf32> to vector<96x128xf32>
    %cst = arith.constant dense<0.000000e+00> : vector<8x128xf32>
    %4 = tpu.matmul %1, %3, %cst {dimension_numbers = #tpu.dot_dimension_numbers<[1], [0], [0], [1], [0, 0, 1, 1], [], []>} : vector<8x96xf32>, vector<96x128xf32>, vector<8x128xf32> -> vector<8x128xf32>
    %c1 = arith.constant 1 : index
    %c0_5 = arith.constant 0 : index
    %c0_6 = arith.constant 0 : index
    %5 = vector.load %arg1[%c1, %c0_5, %c0_6] : memref<3x8x96xf32, #tpu.memory_space<vmem>>, vector<1x8x96xf32>
    %6 = vector.shape_cast %5 : vector<1x8x96xf32> to vector<8x96xf32>
    %c1_7 = arith.constant 1 : index
    %c0_8 = arith.constant 0 : index
    %c0_9 = arith.constant 0 : index
    %7 = vector.load %arg2[%c1_7, %c0_8, %c0_9] : memref<3x96x128xf32, #tpu.memory_space<vmem>>, vector<1x96x128xf32>
    %8 = vector.shape_cast %7 : vector<1x96x128xf32> to vector<96x128xf32>
    %cst_10 = arith.constant dense<0.000000e+00> : vector<8x128xf32>
    %9 = tpu.matmul %6, %8, %cst_10 {dimension_numbers = #tpu.dot_dimension_numbers<[1], [0], [0], [1], [0, 0, 1, 1], [], []>} : vector<8x96xf32>, vector<96x128xf32>, vector<8x128xf32> -> vector<8x128xf32>
    %10 = arith.addf %4, %9 : vector<8x128xf32>
    %c2 = arith.constant 2 : index
    %c0_11 = arith.constant 0 : index
    %c0_12 = arith.constant 0 : index
    %11 = vector.load %arg1[%c2, %c0_11, %c0_12] : memref<3x8x96xf32, #tpu.memory_space<vmem>>, vector<1x8x96xf32>
    %12 = vector.shape_cast %11 : vector<1x8x96xf32> to vector<8x96xf32>
    %c2_13 = arith.constant 2 : index
    %c0_14 = arith.constant 0 : index
    %c0_15 = arith.constant 0 : index
    %13 = vector.load %arg2[%c2_13, %c0_14, %c0_15] : memref<3x96x128xf32, #tpu.memory_space<vmem>>, vector<1x96x128xf32>
    %14 = vector.shape_cast %13 : vector<1x96x128xf32> to vector<96x128xf32>
    %cst_16 = arith.constant dense<0.000000e+00> : vector<8x128xf32>
    %15 = tpu.matmul %12, %14, %cst_16 {dimension_numbers = #tpu.dot_dimension_numbers<[1], [0], [0], [1], [0, 0, 1, 1], [], []>} : vector<8x96xf32>, vector<96x128xf32>, vector<8x128xf32> -> vector<8x128xf32>
    %16 = arith.addf %10, %15 : vector<8x128xf32>
    %c0_17 = arith.constant 0 : index
    %c0_18 = arith.constant 0 : index
    %17 = vector.load %arg3[%c0_17, %c0_18] : memref<1x128xf32, #tpu.memory_space<vmem>>, vector<1x128xf32>
    %18 = vector.broadcast %17 : vector<1x128xf32> to vector<8x128xf32>
    %19 = arith.addf %16, %18 : vector<8x128xf32>
    %20 = arith.negf %19 : vector<8x128xf32>
    %21 = math.exp %20 : vector<8x128xf32>
    %cst_19 = arith.constant 1.000000e+00 : f32
    %22 = vector.broadcast %cst_19 : f32 to vector<8x128xf32>
    %23 = arith.addf %22, %21 : vector<8x128xf32>
    %24 = arith.divf %22, %23 : vector<8x128xf32>
    %c0_20 = arith.constant 0 : index
    %c0_21 = arith.constant 0 : index
    %25 = vector.load %arg4[%c0_20, %c0_21] : memref<128x128xf32, #tpu.memory_space<vmem>>, vector<128x128xf32>
    %cst_22 = arith.constant dense<0.000000e+00> : vector<8x128xf32>
    %26 = tpu.matmul %24, %25, %cst_22 {dimension_numbers = #tpu.dot_dimension_numbers<[1], [0], [0], [1], [0, 0, 1, 1], [], []>} : vector<8x128xf32>, vector<128x128xf32>, vector<8x128xf32> -> vector<8x128xf32>
    %c0_23 = arith.constant 0 : index
    %c0_24 = arith.constant 0 : index
    %27 = vector.load %arg5[%c0_23, %c0_24] : memref<1x128xf32, #tpu.memory_space<vmem>>, vector<1x128xf32>
    %28 = vector.broadcast %27 : vector<1x128xf32> to vector<8x128xf32>
    %29 = arith.addf %26, %28 : vector<8x128xf32>
    %c0_25 = arith.constant 0 : index
    %c0_26 = arith.constant 0 : index
    %30 = vector.load %arg6[%c0_25, %c0_26] : memref<8x128xf32, #tpu.memory_space<vmem>>, vector<8x128xf32>
    tpu.vector_store %arg6[%c0_25, %c0_26], %29 {strides = array<i32>} : memref<8x128xf32, #tpu.memory_space<vmem>>, vector<8x128xf32>,
    return
  }
  func.func @transform_0(%arg0: i32) -> (i32, i32, i32) {
    %c0_i32 = arith.constant 0 : i32
    %c0_i32_0 = arith.constant 0 : i32
    %c0_i32_1 = arith.constant 0 : i32
    return %c0_i32, %arg0, %c0_i32_0 : i32, i32, i32
  }
  func.func @transform_1(%arg0: i32) -> (i32, i32, i32) {
    %c0_i32 = arith.constant 0 : i32
    %c0_i32_0 = arith.constant 0 : i32
    %c0_i32_1 = arith.constant 0 : i32
    %c0_i32_2 = arith.constant 0 : i32
    return %c0_i32, %c0_i32_0, %c0_i32_1 : i32, i32, i32
  }
  func.func @transform_2(%arg0: i32) -> (i32, i32) {
    %c0_i32 = arith.constant 0 : i32
    %c0_i32_0 = arith.constant 0 : i32
    %c0_i32_1 = arith.constant 0 : i32
    return %c0_i32, %c0_i32_0 : i32, i32
  }
  func.func @transform_3(%arg0: i32) -> (i32, i32) {
    %c0_i32 = arith.constant 0 : i32
    %c0_i32_0 = arith.constant 0 : i32
    %c0_i32_1 = arith.constant 0 : i32
    return %c0_i32, %c0_i32_0 : i32, i32
  }
  func.func @transform_4(%arg0: i32) -> (i32, i32) {
    %c0_i32 = arith.constant 0 : i32
    %c0_i32_0 = arith.constant 0 : i32
    %c0_i32_1 = arith.constant 0 : i32
    return %c0_i32, %c0_i32_0 : i32, i32
  }
  func.func @transform_5(%arg0: i32) -> (i32, i32) {
    %c0_i32 = arith.constant 0 : i32
    %c0_i32_0 = arith.constant 0 : i32
    return %arg0, %c0_i32 : i32, i32
  }
}

</mosaic_0001>

<bundles_post_ra>
// kernel: tpu_custom_call.1
= control target key start
LH: loop header
LB: loop body
LE: loop exit
PB: predicated region body
PF: predicated region fallthrough
CT: control target
= control target key end

     0   :  { %10 = vsyncpa [#allocation3], 0  ;;  %s437_s0 = inlined_call_operand.hbm [shape: f32[3,8,96], index: 0, kind: input, shape index: {}]   ;;  %s438_s1 = inlined_call_operand.hbm [shape: f32[3,96,128], index: 1, kind: input, shape index: {}]   ;;  %s439_s2 = inlined_call_operand.vmem [shape: f32[1,128], index: 2, kind: input, shape index: {}]   ;;  %s440_s3 = inlined_call_operand.hbm [shape: f32[128,128], index: 3, kind: input, shape index: {}]   ;;  %s441_s4 = inlined_call_operand.vmem [shape: f32[1,128], index: 4, kind: input, shape index: {}]   ;;  %s442_s5 = inlined_call_operand.hbm [shape: f32[8,128], index: 5, kind: output, shape index: {}]  }
   0x1   :  { %11 = vsyncpa [#allocation6], 0 }
   0x2   :  { %12 = vsyncpa [#allocation4], 0  ;;  %s30_s20 = sshll.u32 %s438_s1, 4  ;;  %s383_s21 = smov [#allocation5]   ;;  %s31_s20 = int_to_ptr.hbm [resolvable:$true] %s30_s20 }
   0x3   :  { %s32_s22 = sshll.u32 %s383_s21, 4  ;;  %s17_s25 = sshll.u32 %s437_s0, 4  ;;  %s33_s22 = int_to_ptr.vmem [resolvable:$true] %s32_s22  ;;  %s18_s25 = int_to_ptr.hbm [resolvable:$true] %s17_s25 }
   0x4   :  { %s384_s26 = smov 128   ;;  %s385_s27 = smov 8  }
   0x5   :  { %38 = dma.hbm_to_vmem [thread:$0]  %s31_s20, 4608, %s33_s22, [#allocation6], %s384_s26, %s384_s26, %s385_s27  }
   0x6   :  { %s386_s28 = smov [#allocation2]   ;;  %s45_s7 = sshll.u32 %s440_s3, 4  ;;  %s46_s7 = int_to_ptr.hbm [resolvable:$true] %s45_s7 }
   0x7   :  { %s19_s29 = sshll.u32 %s386_s28, 4  ;;  %s387_s1 = smov [#allocation7]   ;;  %s20_s29 = int_to_ptr.vmem [resolvable:$true] %s19_s29 }
   0x8   :  { %25 = dma.hbm_to_vmem [thread:$0]  %s18_s25, 384, %s20_s29, [#allocation3], %s384_s26, %s384_s26, %s385_s27  }
   0x9   :  { %s47_s8 = sshll.u32 %s387_s1, 4  ;;  %s48_s8 = int_to_ptr.vmem [resolvable:$true] %s47_s8 }
   0xa   :  { %53 = dma.hbm_to_vmem [thread:$0]  %s46_s7, 2048, %s48_s8, [#allocation6], %s384_s26, %s384_s26, %s385_s27  }
   0xb   :  { %377 = dma.done.wait [#allocation3], 384  }
   0xc   :  { %378 = vsyncadd [#allocation3], 4294966912 }
   0xd   :  { %379 = dma.done.wait [#allocation6], 6656  }
   0xe   :  { %380 = vsyncadd [#allocation6], 4294960640  ;;  %v157_v0 = vld [vmem:[#allocation5 + $0x118] sm:$0xff]  ;;  %v156_v1 = vld [vmem:[#allocation5 + $0x110] sm:$0xff]  ;;  %vm96_vm0 = vcmask 785408   ;;  %s388_s10 = smov [#allocation8]  }
   0xf   :  { %v95_v2 = vld [vmem:[#allocation5 + $0xb8] sm:$0xff]  ;;  %165 = vmatpush.msra.mxu2 %v157_v0  ;;  %v94_v4 = vld [vmem:[#allocation5 + $0xb0] sm:$0xff]  ;;  %v155_v5 = vld [vmem:[#allocation5 + $0x108] sm:$0xff]  ;;  %s252_s11 = sshll.u32 %s388_s10, 4  ;;  %s254_s14 = sshll.u32 %s442_s5, 4  ;;  %s253_s11 = int_to_ptr.vmem [resolvable:$true] %s252_s11  ;;  %s255_s14 = int_to_ptr.hbm [resolvable:$true] %s254_s14 }
  0x10   :  { %104 = vmatpush.msra.mxu0 %v95_v2  ;;  %v80_v3 = vld [vmem:[#allocation5 + $0x58] sm:$0xff]  ;;  %v79_v6 = vld [vmem:[#allocation5 + $0x50] sm:$0xff]  ;;  %v93_v7 = vld [vmem:[#allocation5 + $0xa8] sm:$0xff] }
  0x11   :  { %127 = vmatpush.msra.mxu1 %v80_v3  ;;  %166 = vmatpush.msra.mxu2 %v156_v1  ;;  %v78_v8 = vld [vmem:[#allocation5 + $0x48] sm:$0xff]  ;;  %v154_v9 = vld [vmem:[#allocation5 + $0x100] sm:$0xff]  ;;  %v153_v12 = vld [vmem:[#allocation5 + $0xf8] sm:$0xff] }
  0x12   :  { %105 = vmatpush.msra.mxu0 %v94_v4  ;;  %v92_v10 = vld [vmem:[#allocation5 + $0xa0] sm:$0xff]  ;;  %v91_v13 = vld [vmem:[#allocation5 + $0x98] sm:$0xff]  ;;  %v152_v15 = vld [vmem:[#allocation5 + $0xf0] sm:$0xff] }
  0x13   :  { %128 = vmatpush.msra.mxu1 %v79_v6  ;;  %167 = vmatpush.msra.mxu2 %v155_v5  ;;  %v77_v11 = vld [vmem:[#allocation5 + $0x40] sm:$0xff]  ;;  %v76_v14 = vld [vmem:[#allocation5 + $0x38] sm:$0xff]  ;;  %v90_v16 = vld [vmem:[#allocation5 + $0x90] sm:$0xff] }
  0x14   :  { %106 = vmatpush.msra.mxu0 %v93_v7  ;;  %v75_v17 = vld [vmem:[#allocation5 + $0x30] sm:$0xff]  ;;  %v151_v18 = vld [vmem:[#allocation5 + $0xe8] sm:$0xff]  ;;  %v150_v21 = vld [vmem:[#allocation5 + $0xe0] sm:$0xff] }
  0x15   :  { %129 = vmatpush.msra.mxu1 %v78_v8  ;;  %168 = vmatpush.msra.mxu2 %v154_v9  ;;  %v89_v19 = vld [vmem:[#allocation5 + $0x88] sm:$0xff]  ;;  %v88_v22 = vld [vmem:[#allocation5 + $0x80] sm:$0xff]  ;;  %v149_v24 = vld [vmem:[#allocation5 + $0xd8] sm:$0xff] }
  0x16   :  { %107 = vmatpush.msra.mxu0 %v92_v10  ;;  %v74_v20 = vld [vmem:[#allocation5 + $0x28] sm:$0xff]  ;;  %v73_v23 = vld [vmem:[#allocation5 + $0x20] sm:$0xff]  ;;  %v87_v25 = vld [vmem:[#allocation5 + $0x78] sm:$0xff] }
  0x17   :  { %130 = vmatpush.msra.mxu1 %v77_v11  ;;  %169 = vmatpush.msra.mxu2 %v153_v12  ;;  %v72_v26 = vld [vmem:[#allocation5 + $0x18] sm:$0xff]  ;;  %v148_v27 = vld [vmem:[#allocation5 + $0xd0] sm:$0xff]  ;;  %v147_v30 = vld [vmem:[#allocation5 + $0xc8] sm:$0xff] }
  0x18   :  { %108 = vmatpush.msra.mxu0 %v91_v13  ;;  %v86_v28 = vld [vmem:[#allocation5 + $0x70] sm:$0xff]  ;;  %v85_v31 = vld [vmem:[#allocation5 + $0x68] sm:$0xff]  ;;  %v146_v33 = vld [vmem:[#allocation5 + $0xc0] sm:$0xff] }
  0x19   :  { %131 = vmatpush.msra.mxu1 %v76_v14  ;;  %170 = vmatpush.msra.mxu2 %v152_v15  ;;  %v71_v29 = vld [vmem:[#allocation5 + $0x10] sm:$0xff]  ;;  %v70_v32 = vld [vmem:[#allocation5 + $0x8] sm:$0xff]  ;;  %v84_v34 = vld [vmem:[#allocation5 + $0x60] sm:$0xff] }
  0x1a   :  { %109 = vmatpush.msra.mxu0 %v90_v16  ;;  %v144_v35 = vld [vmem:[#allocation2 + $0x10] sm:$0xff]  ;;  %v69_v36 = vld [vmem:[#allocation5] sm:$0xff]  ;;  %v82_v37 = vld [vmem:[#allocation2 + $0x8] sm:$0xff] }
  0x1b   :  { %132 = vmatpush.msra.mxu1 %v75_v17  ;;  %171 = vmatpush.msra.mxu2 %v151_v18  ;;  %v68_v38 = vld [vmem:[#allocation2] sm:$0xff]  ;;  %v221_v39 = vld [vmem:[#allocation7 + $0x78] sm:$0xff]  ;;  %v220_v40 = vld [vmem:[#allocation7 + $0x70] sm:$0xff] }
  0x1c   :  { %110 = vmatpush.msra.mxu0 %v89_v19  ;;  %226 = vmatpush.msra.mxu3 %v221_v39  ;;  %v219_v41 = vld [vmem:[#allocation7 + $0x68] sm:$0xff]  ;;  %v218_v42 = vld [vmem:[#allocation7 + $0x60] sm:$0xff]  ;;  %v217_v43 = vld [vmem:[#allocation7 + $0x58] sm:$0xff] }
  0x1d   :  { %133 = vmatpush.msra.mxu1 %v74_v20  ;;  %172 = vmatpush.msra.mxu2 %v150_v21  ;;  %v216_v44 = vld [vmem:[#allocation7 + $0x50] sm:$0xff]  ;;  %v215_v45 = vld [vmem:[#allocation7 + $0x48] sm:$0xff]  ;;  %v214_v46 = vld [vmem:[#allocation7 + $0x40] sm:$0xff] }
  0x1e   :  { %111 = vmatpush.msra.mxu0 %v88_v22  ;;  %227 = vmatpush.msra.mxu3 %v220_v40  ;;  %v213_v47 = vld [vmem:[#allocation7 + $0x38] sm:$0xff]  ;;  %v212_v48 = vld [vmem:[#allocation7 + $0x30] sm:$0xff]  ;;  %v211_v49 = vld [vmem:[#allocation7 + $0x28] sm:$0xff] }
  0x1f   :  { %134 = vmatpush.msra.mxu1 %v73_v23  ;;  %173 = vmatpush.msra.mxu2 %v149_v24  ;;  %v210_v50 = vld [vmem:[#allocation7 + $0x20] sm:$0xff]  ;;  %v209_v51 = vld [vmem:[#allocation7 + $0x18] sm:$0xff]  ;;  %v208_v52 = vld [vmem:[#allocation7 + $0x10] sm:$0xff] }
  0x20   :  { %112 = vmatpush.msra.mxu0 %v87_v25  ;;  %228 = vmatpush.msra.mxu3 %v219_v41  ;;  %v207_v55 = vld [vmem:[#allocation7 + $0x8] sm:$0xff]  ;;  %v206_v57 = vld [vmem:[#allocation7] sm:$0xff] }
  0x21   :  { %135 = vmatpush.msra.mxu1 %v72_v26  ;;  %174 = vmatpush.msra.mxu2 %v148_v27  ;;  %v275_v58 = vld [vmem:[%s439_s2] ss:$0 sm:$0xff] }
  0x22   :  { %113 = vmatpush.msra.mxu0 %v86_v28  ;;  %229 = vmatpush.msra.mxu3 %v218_v42  ;;  %v276_v11 = vld [vmem:[%s441_s4] ss:$0 sm:$0xff] }
  0x23   :  { %136 = vmatpush.msra.mxu1 %v71_v29  ;;  %175 = vmatpush.msra.mxu2 %v147_v30 }
  0x24   :  { %114 = vmatpush.msra.mxu0 %v85_v31  ;;  %230 = vmatpush.msra.mxu3 %v217_v43 }
  0x25   :  { %137 = vmatpush.msra.mxu1 %v70_v32  ;;  %176 = vmatpush.msra.mxu2 %v146_v33 }
  0x26   :  { %115 = vmatpush.msra.mxu0 %v84_v34  ;;  %267 = vmatmul.msk.f32.vlgmr.msra.gmra.mxu2 %vm96_vm0, %v144_v35 }
  0x27   :  { %138 = vmatpush.msra.mxu1 %v69_v36  ;;  %265 = vmatmul.msk.f32.vlgmr.msra.gmra.mxu0 %vm96_vm0, %v82_v37 }
  0x28   :  { %266 = vmatmul.msk.f32.vlgmr.msra.gmra.mxu1 %vm96_vm0, %v68_v38  ;;  %231 = vmatpush.msra.mxu3 %v216_v44 }
  0x2a   :  { %232 = vmatpush.msra.mxu3 %v215_v45 }
  0x2c   :  { %233 = vmatpush.msra.mxu3 %v214_v46 }
  0x2e   :  { %234 = vmatpush.msra.mxu3 %v213_v47 }
  0x30   :  { %235 = vmatpush.msra.mxu3 %v212_v48 }
  0x32   :  { %236 = vmatpush.msra.mxu3 %v211_v49 }
  0x34   :  { %237 = vmatpush.msra.mxu3 %v210_v50 }
  0x36   :  { %238 = vmatpush.msra.mxu3 %v209_v51 }
  0x38   :  { %239 = vmatpush.msra.mxu3 %v208_v52 }
  0x3a   :  { %240 = vmatpush.msra.mxu3 %v207_v55 }
  0x3c   :  { %241 = vmatpush.msra.mxu3 %v206_v57 }
  0xa4   :  { %v117_v53 = vpop.f32.mrf.mxu0 }
  0xa5   :  { %v140_v54 = vpop.f32.mrf.mxu1 }
  0xa6   :  { %v141_v56 = vadd.f32 %v140_v54, %v117_v53 }
  0xa9   :  { %v178_v59 = vpop.f32.mrf.mxu2 }
  0xaa   :  { %v181_v60 = vadd.f32 %v178_v59, %v141_v56 }
  0xac   :  { %v186_v61 = vadd.f32 %v275_v58, %v181_v60 }
  0xae   :  { %v268_v62 = vmul.f32 -1.442695, %v186_v61 }
  0xb0   :  { %277 = vpow2.f32 %v268_v62 }
  0xb6   :  { %v278_v63 = vpop.eup %277 }
  0xb7   :  { %v190_v0 = vadd.f32 1.0, %v278_v63 }
  0xb9   :  { %279 = vrcp.f32 %v190_v0  ;;  %v202_v4 = vand.u32 2147483648, %v190_v0  ;;  %v200_v6 = vand.u32 2147483647, %v190_v0  ;;  %vm196_vm2 = vweird.f32 %v190_v0 }
  0xbb   :  { %v203_v8 = vor.u32 1.1754944e-38, %v202_v4  ;;  %vm201_vm4 = vcmp.eq.f32.partialorder %v200_v6, 8.507059e+37 }
  0xbf   :  { %v280_v1 = vpop.eup %279 }
  0xc0   :  { %v192_v2 = vmul.f32 %v280_v1, %v190_v0  ;;  %vm197_vm1 = vweird.f32 %v280_v1 }
  0xc1   :  { %vm198_vm3 = vmor %vm196_vm2, %vm197_vm1 }
  0xc2   :  { %v193_v3 = vsub.f32 1.0, %v192_v2 }
  0xc4   :  { %v194_v5 = vmul.f32 %v280_v1, %v193_v3 }
  0xc6   :  { %v195_v7 = vadd.f32 %v280_v1, %v194_v5 }
  0xc8   :  { %v199_v9 = vsel %vm198_vm3, %v280_v1, %v195_v7 }
  0xc9   :  { %v204_v10 = vsel %vm201_vm4, %v203_v8, %v199_v9 }
  0xca   :  { %242 = vmatmul.f32.vlgmr.msra.gmra.mxu3 %v204_v10 }
 0x14d   :  { %v243_v12 = vpop.f32.mrf.mxu3 }
 0x14e   :  { %v244_v13 = vadd.f32 %v276_v11, %v243_v12 }
 0x150   :  { %246 = vst [vmem:[#allocation8] sm:$0xff] %v244_v13 }
 0x151   :  { %257 = dma.vmem_to_hbm [thread:$0]  %s253_s11, 128, %s255_s14, [#allocation4]  }
 0x152   :  { %381 = dma.done.wait [#allocation4], 128  }
 0x153   :  { %382 = vsyncadd [#allocation4], 4294967168 }
 0x154   :  { %262 = vsyncpa [#allocation3], 1 }
 0x155   :  { %263 = vsyncpa [#allocation6], 1 }
 0x156   :  { %264 = vsyncpa [#allocation4], 1 }

</bundles_post_ra>
